<compile_context>
chip_gen: v5e
topology: v5e:2x2
jax: 0.10.0
libtpu: 0.0.40
codegen_flags: <defaults>
</compile_context>

<pallas_src>
import jax
import jax.numpy as jnp
from jax.experimental import pallas as pl
from jax.experimental.pallas import tpu as pltpu

# ---------------- configuration (scaled-down module hyperparams) -------------
IDX = [4, 11, 17, 23]          # intermediate_layer_idx
L = len(IDX)                   # num selected layers = 4
B = 2                          # batch
V = 2                          # num_views
S = 8                          # seq_len  (keep a multiple of 8; pad wrapper-side otherwise)
H = 32                         # input_dim (hidden_dim of tokens)   (2048 real)
C1 = 64                        # first conv out channels            (1024 real)
C2 = 32                        # second conv out channels           (512 real)
F = L * C2                     # concatenated feature size
P1 = 64                        # final_proj hidden                  (1024 real)
OUT = 16                       # output_dim                         (512 real)

M_ROWS = B * S                 # matmul M rows handled per (view, layer) grid step

assert S % 8 == 0, "pad S to a multiple of 8 wrapper-side (keeps reshapes layout-free)"


# ------------------------------ kernel ---------------------------------------
def _conv1d_k3(x_bf16, w_ref, bias_f32, is_first, is_last):
    """k=3, padding=1 Conv1d over the S axis, channels-last.

    x_bf16:   [M_ROWS, Cin] bf16, rows ordered (b, s) with s fastest.
    w_ref:    [3, Cin, Cout] bf16 ref (tap, in, out).
    bias_f32: [1, Cout] f32.
    is_first / is_last: [M_ROWS, 1] bool masks (hoisted, shared by both convs).
    Returns pre-activation [M_ROWS, Cout] f32.

    3 unshifted bf16 MXU matmuls (f32 accumulation); tap shifts are applied to the
    OUTPUTS with an XLU sublane roll and padding rows are zeroed on the VPU --
    no padded/shifted VMEM copies of the activations.
    """
    m = x_bf16.shape[0]
    p0 = jnp.dot(x_bf16, w_ref[0], preferred_element_type=jnp.float32)
    p1 = jnp.dot(x_bf16, w_ref[1], preferred_element_type=jnp.float32)
    p2 = jnp.dot(x_bf16, w_ref[2], preferred_element_type=jnp.float32)
    # tap 0 reads x[s-1] -> out[s] += p0[s-1]; zero at s == 0 (left pad)
    left = jnp.where(is_first, 0.0, pltpu.roll(p0, shift=1, axis=0))
    # tap 2 reads x[s+1] -> out[s] += p2[s+1]; zero at s == S-1 (right pad)
    right = jnp.where(is_last, 0.0, pltpu.roll(p2, shift=m - 1, axis=0))
    return left + p1 + right + bias_f32


def fused_kernel(x_ref, w1_ref, b1_ref, w2_ref, b2_ref,
                 wp1_ref, bp1_ref, wp2_ref, bp2_ref,
                 out_ref, h_acc):
    # x_ref:  [B, 1, S, H] bf16  (this view's tokens for this layer)
    # w1_ref: [3, H, C1] bf16   b1_ref: [1, C1] f32
    # w2_ref: [3, C1, C2] bf16  b2_ref: [1, C2] f32
    # wp1_ref:[C2, P1] bf16     (this layer's slice of Wp1, 1/S pre-folded)
    # bp1_ref:[1, P1] f32  wp2_ref:[P1, OUT] bf16  bp2_ref:[1, OUT] f32
    # out_ref:[1, B, OUT] f32   h_acc (scratch): [B, P1] f32
    l = pl.program_id(1)

    # Hoisted boundary masks (computed once per grid step, shared by both convs).
    s_pos = jax.lax.broadcasted_iota(jnp.int32, (M_ROWS, 1), 0) % S
    is_first = s_pos == 0
    is_last = s_pos == S - 1

    # fold (B, S) into the matmul M dimension; bf16 goes straight to the MXU
    x = x_ref[...].reshape(M_ROWS, H)                                   # bf16

    # Conv1d(H->C1, k=3, p=1) + ReLU (f32)
    y = jnp.maximum(_conv1d_k3(x, w1_ref, b1_ref[...], is_first, is_last), 0.0)
    # Conv1d(C1->C2, k=3, p=1) + ReLU (f32); cast to bf16 only at the matmul input
    z = jnp.maximum(_conv1d_k3(y.astype(jnp.bfloat16), w2_ref, b2_ref[...],
                               is_first, is_last), 0.0)                 # [M, C2]

    # AdaptiveAvgPool1d(1): sum over S (1/S is folded into wp1 by the wrapper)
    feats = jnp.sum(z.reshape(B, S, C2), axis=1)                        # [B, C2] f32

    # fused final_proj first Linear:
    #   Linear(concat_l feats_l) == sum_l feats_l @ Wp1[l*C2:(l+1)*C2, :]
    @pl.when(l == 0)
    def _():
        h_acc[...] = jnp.zeros_like(h_acc)

    h_acc[...] += jnp.dot(feats.astype(jnp.bfloat16), wp1_ref[...],
                          preferred_element_type=jnp.float32)           # [B, P1]

    @pl.when(l == L - 1)
    def _():
        h = jnp.maximum(h_acc[...] + bp1_ref[...], 0.0)                 # [B, P1] f32
        o = jnp.dot(h.astype(jnp.bfloat16), wp2_ref[...],
                    preferred_element_type=jnp.float32) + bp2_ref[...]  # [B, OUT]
        out_ref[...] = o.reshape(1, B, OUT).astype(out_ref.dtype)


# ----------------------------- pallas_call glue -------------------------------
def _vmem_limit_bytes():
    """Explicit scoped-VMEM budget: double-buffered blocks + scratch, with headroom,
    clamped so it is also safe on v7x (64 MiB physical VMEM)."""
    bf2, f4 = 2, 4
    blocks = (B * S * H * bf2
              + 3 * H * C1 * bf2 + C1 * f4
              + 3 * C1 * C2 * bf2 + C2 * f4
              + C2 * P1 * bf2 + P1 * f4
              + P1 * OUT * bf2 + OUT * f4
              + B * OUT * f4)
    need = 2 * blocks + B * P1 * f4
    return int(min(max(8 * need, 16 * 2**20), 32 * 2**20))


def vggt_projector(aggregated_tokens_list, params):
    """aggregated_tokens_list: list of 24 arrays, each [B, V, S, H] (f32).
    Returns [B, V, OUT] f32 (matches PyTorch output [batch, num_views, output_dim])."""
    # Layer selection fused with the bf16 cast: casts are elementwise and fold into
    # the stack/concat, so the pre-kernel HBM traffic is halved vs stacking in f32.
    sel = jnp.stack([aggregated_tokens_list[i].astype(jnp.bfloat16) for i in IDX],
                    axis=0)                                              # [L,B,V,S,H] bf16

    # bf16 weights for the MXU (f32 accumulation stays via preferred_element_type);
    # biases stay f32 (added to f32 accumulations; v5e has no bf16 VPU).
    w1 = params["W1"].astype(jnp.bfloat16)                               # [L,3,H,C1]
    w2 = params["W2"].astype(jnp.bfloat16)                               # [L,3,C1,C2]
    # Fold the exact 1/S mean-pool scale into Wp1 (S is a power of two) and pre-slice
    # per layer for the L-axis accumulation.
    wp1 = (params["Wp1"] * (1.0 / S)).reshape(L, C2, P1).astype(jnp.bfloat16)
    wp2 = params["Wp2"].astype(jnp.bfloat16)                             # [P1,OUT]

    # TODO(synk): for production shapes (H=2048, C1=1024, C2=512, S~1.4k) add an
    # innermost S-tile grid axis with 1-row halos + global-s masks, and re-derive
    # the tile sweep for v7x's 64 MiB VMEM (see header notes).
    out_vb = pl.pallas_call(
        fused_kernel,
        out_shape=jax.ShapeDtypeStruct((V, B, OUT), jnp.float32),
        grid=(V, L),
        in_specs=[
            pl.BlockSpec((None, B, 1, S, H), lambda v, l: (l, 0, v, 0, 0)),
            pl.BlockSpec((None, 3, H, C1), lambda v, l: (l, 0, 0, 0)),
            pl.BlockSpec((None, 1, C1), lambda v, l: (l, 0, 0)),
            pl.BlockSpec((None, 3, C1, C2), lambda v, l: (l, 0, 0, 0)),
            pl.BlockSpec((None, 1, C2), lambda v, l: (l, 0, 0)),
            pl.BlockSpec((None, C2, P1), lambda v, l: (l, 0, 0)),
            pl.BlockSpec((1, P1), lambda v, l: (0, 0)),
            pl.BlockSpec((P1, OUT), lambda v, l: (0, 0)),
            pl.BlockSpec((1, OUT), lambda v, l: (0, 0)),
        ],
        # output block constant across L -> stays resident, written at l == L-1
        out_specs=pl.BlockSpec((1, B, OUT), lambda v, l: (v, 0, 0)),
        scratch_shapes=[pltpu.VMEM((B, P1), jnp.float32)],
        compiler_params=pltpu.CompilerParams(
            dimension_semantics=("parallel", "arbitrary"),
            vmem_limit_bytes=_vmem_limit_bytes()),
    )(sel, w1, params["B1"], w2, params["B2"],
      wp1, params["Bp1"], wp2, params["Bp2"])

    # tiny (V*B*OUT elements) layout fix back to the PyTorch [batch, views, out] order
    return jnp.transpose(out_vb, (1, 0, 2))


# ----------------------------- pure-JAX reference ------------------------------
# Independent implementation (XLA conv/dot) with the SAME precision policy as the
# kernel: bf16 matmul/conv inputs, f32 accumulation, f32 elementwise.
def _conv1d_ncw(x_ncw, w_oiw, b_f32):
    out = jax.lax.conv_general_dilated(
        x_ncw, w_oiw, window_strides=(1,), padding=((1, 1),),
        dimension_numbers=("NCW", "OIW", "NCW"),
        preferred_element_type=jnp.float32)
    return out + b_f32[None, :, None]


def reference_forward(aggregated_tokens_list, params):
    sel = jnp.stack([aggregated_tokens_list[i].astype(jnp.bfloat16) for i in IDX],
                    axis=1)                                             # [B,L,V,S,H]
    w1b = params["W1"].astype(jnp.bfloat16)
    w2b = params["W2"].astype(jnp.bfloat16)
    wp1b = params["Wp1"].astype(jnp.bfloat16)
    wp2b = params["Wp2"].astype(jnp.bfloat16)
    outs = []
    for v in range(V):
        feats = []
        for l in range(L):
            xt = jnp.transpose(sel[:, l, v, :, :], (0, 2, 1))           # [B, H, S]
            w1 = jnp.transpose(w1b[l], (2, 1, 0))                       # [C1, H, 3]
            w2 = jnp.transpose(w2b[l], (2, 1, 0))                       # [C2, C1, 3]
            y = jax.nn.relu(_conv1d_ncw(xt, w1, params["B1"][l, 0]))
            z = jax.nn.relu(_conv1d_ncw(y.astype(jnp.bfloat16), w2, params["B2"][l, 0]))
            feats.append(jnp.mean(z, axis=2))                           # [B, C2] f32
        f = jnp.concatenate(feats, axis=1)                              # [B, F]
        h = jax.nn.relu(jnp.dot(f.astype(jnp.bfloat16), wp1b,
                                preferred_element_type=jnp.float32) + params["Bp1"][0])
        o = jnp.dot(h.astype(jnp.bfloat16), wp2b,
                    preferred_element_type=jnp.float32) + params["Bp2"][0]
        outs.append(o)
    return jnp.stack(outs, axis=1)                                      # [B, V, OUT]


# ----------------------------------- main --------------------------------------
if __name__ == "__main__":
    key = jax.random.PRNGKey(0)
    keys = jax.random.split(key, 12)

    scale = 0.05
    params = {
        "W1": scale * jax.random.normal(keys[0], (L, 3, H, C1), jnp.float32),
        "B1": scale * jax.random.normal(keys[1], (L, 1, C1), jnp.float32),
        "W2": scale * jax.random.normal(keys[2], (L, 3, C1, C2), jnp.float32),
        "B2": scale * jax.random.normal(keys[3], (L, 1, C2), jnp.float32),
        "Wp1": scale * jax.random.normal(keys[4], (F, P1), jnp.float32),
        "Bp1": scale * jax.random.normal(keys[5], (1, P1), jnp.float32),
        "Wp2": scale * jax.random.normal(keys[6], (P1, OUT), jnp.float32),
        "Bp2": scale * jax.random.normal(keys[7], (1, OUT), jnp.float32),
    }

    # aggregated_tokens_list: 24 tensors of shape [B, num_views, seq_len, hidden_dim]
    tok_keys = jax.random.split(keys[8], 24)
    aggregated_tokens_list = [
        jax.random.normal(tok_keys[i], (B, V, S, H), jnp.float32) for i in range(24)
    ]

    out = jax.block_until_ready(vggt_projector(aggregated_tokens_list, params))
    ref = jax.block_until_ready(reference_forward(aggregated_tokens_list, params))

    assert out.shape == (B, V, OUT), out.shape
    max_err = float(jnp.max(jnp.abs(out - ref)))
    assert jnp.allclose(out, ref, rtol=1e-3, atol=1e-3), max_err
    print("KERNEL_OK")
</pallas_src>

<mosaic_0001>
module attributes {stable_mosaic.version = 11 : i64} {
  func.func @fused_kernel(%arg0: i32, %arg1: i32, %arg2: memref<1x2x1x8x32xbf16, #tpu.memory_space<vmem>>, %arg3: memref<1x3x32x64xbf16, #tpu.memory_space<vmem>>, %arg4: memref<1x1x64xf32, #tpu.memory_space<vmem>>, %arg5: memref<1x3x64x32xbf16, #tpu.memory_space<vmem>>, %arg6: memref<1x1x32xf32, #tpu.memory_space<vmem>>, %arg7: memref<1x32x64xbf16, #tpu.memory_space<vmem>>, %arg8: memref<1x64xf32, #tpu.memory_space<vmem>>, %arg9: memref<64x16xbf16, #tpu.memory_space<vmem>>, %arg10: memref<1x16xf32, #tpu.memory_space<vmem>>, %arg11: memref<1x2x16xf32, #tpu.memory_space<vmem>>, %arg12: memref<2x64xf32, #tpu.memory_space<vmem>>) attributes {dimension_semantics = [#tpu.dimension_semantics<parallel>, #tpu.dimension_semantics<arbitrary>], iteration_bounds = array<i64: 2, 4>, scalar_prefetch = 0 : i64, scratch_operands = 1 : i64, tpu.core_type = #tpu.core_type<tc>, window_params = [{transform_indices = @transform_0, window_bounds = array<i64: 1, 2, 1, 8, 32>}, {transform_indices = @transform_1, window_bounds = array<i64: 1, 3, 32, 64>}, {transform_indices = @transform_2, window_bounds = array<i64: 1, 1, 64>}, {transform_indices = @transform_3, window_bounds = array<i64: 1, 3, 64, 32>}, {transform_indices = @transform_4, window_bounds = array<i64: 1, 1, 32>}, {transform_indices = @transform_5, window_bounds = array<i64: 1, 32, 64>}, {pipeline_mode = #tpu.pipeline_mode<synchronous>, transform_indices = @transform_6, window_bounds = array<i64: 1, 64>}, {pipeline_mode = #tpu.pipeline_mode<synchronous>, transform_indices = @transform_7, window_bounds = array<i64: 64, 16>}, {pipeline_mode = #tpu.pipeline_mode<synchronous>, transform_indices = @transform_8, window_bounds = array<i64: 1, 16>}, {transform_indices = @transform_9, window_bounds = array<i64: 1, 2, 16>}]} {
    %0 = tpu.iota {dimensions = array<i32: 0>} : vector<16x1xi32>
    %c8_i32 = arith.constant 8 : i32
    %c0_i32 = arith.constant 0 : i32
    %1 = arith.cmpi eq, %c8_i32, %c0_i32 : i32
    %c1_i32 = arith.constant 1 : i32
    %2 = arith.select %1, %c1_i32, %c8_i32 : i32
    %3 = vector.broadcast %2 : i32 to vector<16x1xi32>
    %4 = arith.remsi %0, %3 : vector<16x1xi32>
    %c0_i32_0 = arith.constant 0 : i32
    %5 = vector.broadcast %c0_i32_0 : i32 to vector<16x1xi32>
    %6 = arith.cmpi ne, %4, %5 : vector<16x1xi32>
    %c0_i32_1 = arith.constant 0 : i32
    %7 = vector.broadcast %c0_i32_1 : i32 to vector<16x1xi32>
    %8 = arith.cmpi slt, %4, %7 : vector<16x1xi32>
    %c0_i32_2 = arith.constant 0 : i32
    %9 = arith.cmpi slt, %2, %c0_i32_2 : i32
    %10 = vector.broadcast %9 : i1 to vector<16x1xi1>
    %11 = vector.broadcast %10 : vector<16x1xi1> to vector<16x1xi1>
    %12 = arith.xori %8, %11 : vector<16x1xi1>
    %13 = arith.andi %12, %6 : vector<16x1xi1>
    %14 = vector.broadcast %2 : i32 to vector<16x1xi32>
    %15 = arith.addi %4, %14 : vector<16x1xi32>
    %16 = arith.select %13, %15, %4 : vector<16x1xi1>, vector<16x1xi32>
    %c0_i32_3 = arith.constant 0 : i32
    %17 = vector.broadcast %c0_i32_3 : i32 to vector<16x1xi32>
    %18 = arith.cmpi eq, %16, %17 : vector<16x1xi32>
    %c7_i32 = arith.constant 7 : i32
    %19 = vector.broadcast %c7_i32 : i32 to vector<16x1xi32>
    %20 = arith.cmpi eq, %16, %19 : vector<16x1xi32>
    %c0 = arith.constant 0 : index
    %c0_4 = arith.constant 0 : index
    %c0_5 = arith.constant 0 : index
    %c0_6 = arith.constant 0 : index
    %c0_7 = arith.constant 0 : index
    %21 = vector.load %arg2[%c0, %c0_4, %c0_5, %c0_6, %c0_7] : memref<1x2x1x8x32xbf16, #tpu.memory_space<vmem>>, vector<1x2x1x8x32xbf16>
    %22 = vector.shape_cast %21 : vector<1x2x1x8x32xbf16> to vector<2x1x8x32xbf16>
    %23 = vector.shape_cast %22 : vector<2x1x8x32xbf16> to vector<16x32xbf16>
    %c0_8 = arith.constant 0 : index
    %c0_9 = arith.constant 0 : index
    %c0_10 = arith.constant 0 : index
    %24 = vector.load %arg4[%c0_8, %c0_9, %c0_10] : memref<1x1x64xf32, #tpu.memory_space<vmem>>, vector<1x1x64xf32>
    %25 = vector.shape_cast %24 : vector<1x1x64xf32> to vector<1x64xf32>
    %c0_11 = arith.constant 0 : index
    %c0_12 = arith.constant 0 : index
    %c0_13 = arith.constant 0 : index
    %c0_14 = arith.constant 0 : index
    %26 = vector.load %arg3[%c0_11, %c0_12, %c0_13, %c0_14] : memref<1x3x32x64xbf16, #tpu.memory_space<vmem>>, vector<1x1x32x64xbf16>
    %27 = vector.shape_cast %26 : vector<1x1x32x64xbf16> to vector<32x64xbf16>
    %cst = arith.constant dense<0.000000e+00> : vector<16x64xf32>
    %28 = tpu.matmul %23, %27, %cst {dimension_numbers = #tpu.dot_dimension_numbers<[1], [0], [0], [1], [0, 0, 1, 1], [], []>} : vector<16x32xbf16>, vector<32x64xbf16>, vector<16x64xf32> -> vector<16x64xf32>
    %c0_15 = arith.constant 0 : index
    %c1 = arith.constant 1 : index
    %c0_16 = arith.constant 0 : index
    %c0_17 = arith.constant 0 : index
    %29 = vector.load %arg3[%c0_15, %c1, %c0_16, %c0_17] : memref<1x3x32x64xbf16, #tpu.memory_space<vmem>>, vector<1x1x32x64xbf16>
    %30 = vector.shape_cast %29 : vector<1x1x32x64xbf16> to vector<32x64xbf16>
    %cst_18 = arith.constant dense<0.000000e+00> : vector<16x64xf32>
    %31 = tpu.matmul %23, %30, %cst_18 {dimension_numbers = #tpu.dot_dimension_numbers<[1], [0], [0], [1], [0, 0, 1, 1], [], []>} : vector<16x32xbf16>, vector<32x64xbf16>, vector<16x64xf32> -> vector<16x64xf32>
    %c0_19 = arith.constant 0 : index
    %c2 = arith.constant 2 : index
    %c0_20 = arith.constant 0 : index
    %c0_21 = arith.constant 0 : index
    %32 = vector.load %arg3[%c0_19, %c2, %c0_20, %c0_21] : memref<1x3x32x64xbf16, #tpu.memory_space<vmem>>, vector<1x1x32x64xbf16>
    %33 = vector.shape_cast %32 : vector<1x1x32x64xbf16> to vector<32x64xbf16>
    %cst_22 = arith.constant dense<0.000000e+00> : vector<16x64xf32>
    %34 = tpu.matmul %23, %33, %cst_22 {dimension_numbers = #tpu.dot_dimension_numbers<[1], [0], [0], [1], [0, 0, 1, 1], [], []>} : vector<16x32xbf16>, vector<32x64xbf16>, vector<16x64xf32> -> vector<16x64xf32>
    %c1_i32_23 = arith.constant 1 : i32
    %35 = tpu.dynamic_rotate %28 by %c1_i32_23 dim 0 : vector<16x64xf32>, i32 -> vector<16x64xf32>
    %cst_24 = arith.constant 0.000000e+00 : f32
    %36 = vector.shape_cast %18 : vector<16x1xi1> to vector<16x1xi1>
    %37 = vector.broadcast %36 : vector<16x1xi1> to vector<16x64xi1>
    %38 = vector.broadcast %cst_24 : f32 to vector<16x64xf32>
    %39 = arith.select %37, %38, %35 : vector<16x64xi1>, vector<16x64xf32>
    %c15_i32 = arith.constant 15 : i32
    %40 = tpu.dynamic_rotate %34 by %c15_i32 dim 0 : vector<16x64xf32>, i32 -> vector<16x64xf32>
    %cst_25 = arith.constant 0.000000e+00 : f32
    %41 = vector.shape_cast %20 : vector<16x1xi1> to vector<16x1xi1>
    %42 = vector.broadcast %41 : vector<16x1xi1> to vector<16x64xi1>
    %43 = vector.broadcast %cst_25 : f32 to vector<16x64xf32>
    %44 = arith.select %42, %43, %40 : vector<16x64xi1>, vector<16x64xf32>
    %45 = arith.addf %39, %31 : vector<16x64xf32>
    %46 = arith.addf %45, %44 : vector<16x64xf32>
    %47 = vector.broadcast %25 : vector<1x64xf32> to vector<16x64xf32>
    %48 = arith.addf %46, %47 : vector<16x64xf32>
    %cst_26 = arith.constant 0.000000e+00 : f32
    %49 = vector.broadcast %cst_26 : f32 to vector<16x64xf32>
    %50 = arith.maximumf %48, %49 : vector<16x64xf32>
    %51 = arith.truncf %50 : vector<16x64xf32> to vector<16x64xbf16>
    %c0_27 = arith.constant 0 : index
    %c0_28 = arith.constant 0 : index
    %c0_29 = arith.constant 0 : index
    %52 = vector.load %arg6[%c0_27, %c0_28, %c0_29] : memref<1x1x32xf32, #tpu.memory_space<vmem>>, vector<1x1x32xf32>
    %53 = vector.shape_cast %52 : vector<1x1x32xf32> to vector<1x32xf32>
    %c0_30 = arith.constant 0 : index
    %c0_31 = arith.constant 0 : index
    %c0_32 = arith.constant 0 : index
    %c0_33 = arith.constant 0 : index
    %54 = vector.load %arg5[%c0_30, %c0_31, %c0_32, %c0_33] : memref<1x3x64x32xbf16, #tpu.memory_space<vmem>>, vector<1x1x64x32xbf16>
    %55 = vector.shape_cast %54 : vector<1x1x64x32xbf16> to vector<64x32xbf16>
    %cst_34 = arith.constant dense<0.000000e+00> : vector<16x32xf32>
    %56 = tpu.matmul %51, %55, %cst_34 {dimension_numbers = #tpu.dot_dimension_numbers<[1], [0], [0], [1], [0, 0, 1, 1], [], []>} : vector<16x64xbf16>, vector<64x32xbf16>, vector<16x32xf32> -> vector<16x32xf32>
    %c0_35 = arith.constant 0 : index
    %c1_36 = arith.constant 1 : index
    %c0_37 = arith.constant 0 : index
    %c0_38 = arith.constant 0 : index
    %57 = vector.load %arg5[%c0_35, %c1_36, %c0_37, %c0_38] : memref<1x3x64x32xbf16, #tpu.memory_space<vmem>>, vector<1x1x64x32xbf16>
    %58 = vector.shape_cast %57 : vector<1x1x64x32xbf16> to vector<64x32xbf16>
    %cst_39 = arith.constant dense<0.000000e+00> : vector<16x32xf32>
    %59 = tpu.matmul %51, %58, %cst_39 {dimension_numbers = #tpu.dot_dimension_numbers<[1], [0], [0], [1], [0, 0, 1, 1], [], []>} : vector<16x64xbf16>, vector<64x32xbf16>, vector<16x32xf32> -> vector<16x32xf32>
    %c0_40 = arith.constant 0 : index
    %c2_41 = arith.constant 2 : index
    %c0_42 = arith.constant 0 : index
    %c0_43 = arith.constant 0 : index
    %60 = vector.load %arg5[%c0_40, %c2_41, %c0_42, %c0_43] : memref<1x3x64x32xbf16, #tpu.memory_space<vmem>>, vector<1x1x64x32xbf16>
    %61 = vector.shape_cast %60 : vector<1x1x64x32xbf16> to vector<64x32xbf16>
    %cst_44 = arith.constant dense<0.000000e+00> : vector<16x32xf32>
    %62 = tpu.matmul %51, %61, %cst_44 {dimension_numbers = #tpu.dot_dimension_numbers<[1], [0], [0], [1], [0, 0, 1, 1], [], []>} : vector<16x64xbf16>, vector<64x32xbf16>, vector<16x32xf32> -> vector<16x32xf32>
    %c1_i32_45 = arith.constant 1 : i32
    %63 = tpu.dynamic_rotate %56 by %c1_i32_45 dim 0 : vector<16x32xf32>, i32 -> vector<16x32xf32>
    %cst_46 = arith.constant 0.000000e+00 : f32
    %64 = vector.shape_cast %18 : vector<16x1xi1> to vector<16x1xi1>
    %65 = vector.broadcast %64 : vector<16x1xi1> to vector<16x32xi1>
    %66 = vector.broadcast %cst_46 : f32 to vector<16x32xf32>
    %67 = arith.select %65, %66, %63 : vector<16x32xi1>, vector<16x32xf32>
    %c15_i32_47 = arith.constant 15 : i32
    %68 = tpu.dynamic_rotate %62 by %c15_i32_47 dim 0 : vector<16x32xf32>, i32 -> vector<16x32xf32>
    %cst_48 = arith.constant 0.000000e+00 : f32
    %69 = vector.shape_cast %20 : vector<16x1xi1> to vector<16x1xi1>
    %70 = vector.broadcast %69 : vector<16x1xi1> to vector<16x32xi1>
    %71 = vector.broadcast %cst_48 : f32 to vector<16x32xf32>
    %72 = arith.select %70, %71, %68 : vector<16x32xi1>, vector<16x32xf32>
    %73 = arith.addf %67, %59 : vector<16x32xf32>
    %74 = arith.addf %73, %72 : vector<16x32xf32>
    %75 = vector.broadcast %53 : vector<1x32xf32> to vector<16x32xf32>
    %76 = arith.addf %74, %75 : vector<16x32xf32>
    %cst_49 = arith.constant 0.000000e+00 : f32
    %77 = vector.broadcast %cst_49 : f32 to vector<16x32xf32>
    %78 = arith.maximumf %76, %77 : vector<16x32xf32>
    %79 = vector.shape_cast %78 : vector<16x32xf32> to vector<2x8x32xf32>
    %cst_50 = arith.constant dense<0.000000e+00> : vector<2x32xf32>
    %80 = vector.multi_reduction <add>, %79, %cst_50 [1] : vector<2x8x32xf32> to vector<2x32xf32>
    %c0_i32_51 = arith.constant 0 : i32
    %81 = arith.cmpi eq, %arg1, %c0_i32_51 : i32
    %82 = arith.extui %81 : i1 to i32
    %c0_i32_52 = arith.constant 0 : i32
    %83 = arith.cmpi ne, %82, %c0_i32_52 : i32
    scf.if %83 {
      %cst_62 = arith.constant 0.000000e+00 : f32
      %94 = vector.broadcast %cst_62 : f32 to vector<2x64xf32>
      %c0_63 = arith.constant 0 : index
      %c0_64 = arith.constant 0 : index
      %95 = vector.load %arg12[%c0_63, %c0_64] : memref<2x64xf32, #tpu.memory_space<vmem>>, vector<2x64xf32>
      tpu.vector_store %arg12[%c0_63, %c0_64], %94 {strides = array<i32>} : memref<2x64xf32, #tpu.memory_space<vmem>>, vector<2x64xf32>,
    } else {
    }
    %c0_53 = arith.constant 0 : index
    %c0_54 = arith.constant 0 : index
    %84 = vector.load %arg12[%c0_53, %c0_54] : memref<2x64xf32, #tpu.memory_space<vmem>>, vector<2x64xf32>
    %85 = arith.truncf %80 : vector<2x32xf32> to vector<2x32xbf16>
    %c0_55 = arith.constant 0 : index
    %c0_56 = arith.constant 0 : index
    %c0_57 = arith.constant 0 : index
    %86 = vector.load %arg7[%c0_55, %c0_56, %c0_57] : memref<1x32x64xbf16, #tpu.memory_space<vmem>>, vector<1x32x64xbf16>
    %87 = vector.shape_cast %86 : vector<1x32x64xbf16> to vector<32x64xbf16>
    %cst_58 = arith.constant dense<0.000000e+00> : vector<2x64xf32>
    %88 = tpu.matmul %85, %87, %cst_58 {dimension_numbers = #tpu.dot_dimension_numbers<[1], [0], [0], [1], [0, 0, 1, 1], [], []>} : vector<2x32xbf16>, vector<32x64xbf16>, vector<2x64xf32> -> vector<2x64xf32>
    %89 = arith.addf %84, %88 : vector<2x64xf32>
    %c0_59 = arith.constant 0 : index
    %c0_60 = arith.constant 0 : index
    %90 = vector.load %arg12[%c0_59, %c0_60] : memref<2x64xf32, #tpu.memory_space<vmem>>, vector<2x64xf32>
    tpu.vector_store %arg12[%c0_59, %c0_60], %89 {strides = array<i32>} : memref<2x64xf32, #tpu.memory_space<vmem>>, vector<2x64xf32>,
    %c3_i32 = arith.constant 3 : i32
    %91 = arith.cmpi eq, %arg1, %c3_i32 : i32
    %92 = arith.extui %91 : i1 to i32
    %c0_i32_61 = arith.constant 0 : i32
    %93 = arith.cmpi ne, %92, %c0_i32_61 : i32
    scf.if %93 {
      %c0_62 = arith.constant 0 : index
      %c0_63 = arith.constant 0 : index
      %94 = vector.load %arg12[%c0_62, %c0_63] : memref<2x64xf32, #tpu.memory_space<vmem>>, vector<2x64xf32>
      %c0_64 = arith.constant 0 : index
      %c0_65 = arith.constant 0 : index
      %95 = vector.load %arg8[%c0_64, %c0_65] : memref<1x64xf32, #tpu.memory_space<vmem>>, vector<1x64xf32>
      %96 = vector.broadcast %95 : vector<1x64xf32> to vector<2x64xf32>
      %97 = arith.addf %94, %96 : vector<2x64xf32>
      %cst_66 = arith.constant 0.000000e+00 : f32
      %98 = vector.broadcast %cst_66 : f32 to vector<2x64xf32>
      %99 = arith.maximumf %97, %98 : vector<2x64xf32>
      %100 = arith.truncf %99 : vector<2x64xf32> to vector<2x64xbf16>
      %c0_67 = arith.constant 0 : index
      %c0_68 = arith.constant 0 : index
      %101 = vector.load %arg9[%c0_67, %c0_68] : memref<64x16xbf16, #tpu.memory_space<vmem>>, vector<64x16xbf16>
      %cst_69 = arith.constant dense<0.000000e+00> : vector<2x16xf32>
      %102 = tpu.matmul %100, %101, %cst_69 {dimension_numbers = #tpu.dot_dimension_numbers<[1], [0], [0], [1], [0, 0, 1, 1], [], []>} : vector<2x64xbf16>, vector<64x16xbf16>, vector<2x16xf32> -> vector<2x16xf32>
      %c0_70 = arith.constant 0 : index
      %c0_71 = arith.constant 0 : index
      %103 = vector.load %arg10[%c0_70, %c0_71] : memref<1x16xf32, #tpu.memory_space<vmem>>, vector<1x16xf32>
      %104 = vector.broadcast %103 : vector<1x16xf32> to vector<2x16xf32>
      %105 = arith.addf %102, %104 : vector<2x16xf32>
      %106 = vector.shape_cast %105 : vector<2x16xf32> to vector<1x2x16xf32>
      %c0_72 = arith.constant 0 : index
      %c0_73 = arith.constant 0 : index
      %c0_74 = arith.constant 0 : index
      %107 = vector.load %arg11[%c0_72, %c0_73, %c0_74] : memref<1x2x16xf32, #tpu.memory_space<vmem>>, vector<1x2x16xf32>
      tpu.vector_store %arg11[%c0_72, %c0_73, %c0_74], %106 {strides = array<i32>} : memref<1x2x16xf32, #tpu.memory_space<vmem>>, vector<1x2x16xf32>,
    } else {
    }
    return
  }
  func.func @transform_0(%arg0: i32, %arg1: i32) -> (i32, i32, i32, i32, i32) {
    %c0_i32 = arith.constant 0 : i32
    %c0_i32_0 = arith.constant 0 : i32
    %c0_i32_1 = arith.constant 0 : i32
    %c0_i32_2 = arith.constant 0 : i32
    return %arg1, %c0_i32, %arg0, %c0_i32_0, %c0_i32_1 : i32, i32, i32, i32, i32
  }
  func.func @transform_1(%arg0: i32, %arg1: i32) -> (i32, i32, i32, i32) {
    %c0_i32 = arith.constant 0 : i32
    %c0_i32_0 = arith.constant 0 : i32
    %c0_i32_1 = arith.constant 0 : i32
    %c0_i32_2 = arith.constant 0 : i32
    return %arg1, %c0_i32, %c0_i32_0, %c0_i32_1 : i32, i32, i32, i32
  }
  func.func @transform_2(%arg0: i32, %arg1: i32) -> (i32, i32, i32) {
    %c0_i32 = arith.constant 0 : i32
    %c0_i32_0 = arith.constant 0 : i32
    %c0_i32_1 = arith.constant 0 : i32
    return %arg1, %c0_i32, %c0_i32_0 : i32, i32, i32
  }
  func.func @transform_3(%arg0: i32, %arg1: i32) -> (i32, i32, i32, i32) {
    %c0_i32 = arith.constant 0 : i32
    %c0_i32_0 = arith.constant 0 : i32
    %c0_i32_1 = arith.constant 0 : i32
    %c0_i32_2 = arith.constant 0 : i32
    return %arg1, %c0_i32, %c0_i32_0, %c0_i32_1 : i32, i32, i32, i32
  }
  func.func @transform_4(%arg0: i32, %arg1: i32) -> (i32, i32, i32) {
    %c0_i32 = arith.constant 0 : i32
    %c0_i32_0 = arith.constant 0 : i32
    %c0_i32_1 = arith.constant 0 : i32
    return %arg1, %c0_i32, %c0_i32_0 : i32, i32, i32
  }
  func.func @transform_5(%arg0: i32, %arg1: i32) -> (i32, i32, i32) {
    %c0_i32 = arith.constant 0 : i32
    %c0_i32_0 = arith.constant 0 : i32
    %c0_i32_1 = arith.constant 0 : i32
    return %arg1, %c0_i32, %c0_i32_0 : i32, i32, i32
  }
  func.func @transform_6(%arg0: i32, %arg1: i32) -> (i32, i32) {
    %c0_i32 = arith.constant 0 : i32
    %c0_i32_0 = arith.constant 0 : i32
    %c0_i32_1 = arith.constant 0 : i32
    return %c0_i32, %c0_i32_0 : i32, i32
  }
  func.func @transform_7(%arg0: i32, %arg1: i32) -> (i32, i32) {
    %c0_i32 = arith.constant 0 : i32
    %c0_i32_0 = arith.constant 0 : i32
    %c0_i32_1 = arith.constant 0 : i32
    return %c0_i32, %c0_i32_0 : i32, i32
  }
  func.func @transform_8(%arg0: i32, %arg1: i32) -> (i32, i32) {
    %c0_i32 = arith.constant 0 : i32
    %c0_i32_0 = arith.constant 0 : i32
    %c0_i32_1 = arith.constant 0 : i32
    return %c0_i32, %c0_i32_0 : i32, i32
  }
  func.func @transform_9(%arg0: i32, %arg1: i32) -> (i32, i32, i32) {
    %c0_i32 = arith.constant 0 : i32
    %c0_i32_0 = arith.constant 0 : i32
    %c0_i32_1 = arith.constant 0 : i32
    return %arg0, %c0_i32, %c0_i32_0 : i32, i32, i32
  }
}

</mosaic_0001>

<bundles_post_ra>
// kernel: tpu_custom_call.1
= control target key start
LH: loop header
LB: loop body
LE: loop exit
PB: predicated region body
PF: predicated region fallthrough
CT: control target
= control target key end

     0   :  { %s1799_s0 = inlined_call_operand.vmem [shape: bf16[4,2,2,8,32], index: 0, kind: input, shape index: {}]   ;;  %s1800_s1 = inlined_call_operand.vmem [shape: bf16[4,3,32,64], index: 1, kind: input, shape index: {}]   ;;  %s1801_s2 = inlined_call_operand.vmem [shape: f32[4,1,64], index: 2, kind: input, shape index: {}]   ;;  %s1802_s3 = inlined_call_operand.vmem [shape: bf16[4,3,64,32], index: 3, kind: input, shape index: {}]   ;;  %s1803_s4 = inlined_call_operand.vmem [shape: f32[4,1,32], index: 4, kind: input, shape index: {}]   ;;  %s1804_s5 = inlined_call_operand.vmem [shape: bf16[4,32,64], index: 5, kind: input, shape index: {}]   ;;  %s1805_s6 = inlined_call_operand.vmem [shape: f32[1,64], index: 6, kind: input, shape index: {}]   ;;  %s1806_s7 = inlined_call_operand.vmem [shape: bf16[64,16], index: 7, kind: input, shape index: {}]   ;;  %s1807_s8 = inlined_call_operand.vmem [shape: f32[1,16], index: 8, kind: input, shape index: {}]   ;;  %s1808_s9 = inlined_call_operand.hbm [shape: f32[2,2,16], index: 9, kind: output, shape index: {}]  }
   0x1   :  { %1816 = sst [smem:[#allocation13_spill]] %s1799_s0 }
   0x2   :  { %1817 = sst [smem:[#allocation14_spill]] %s1808_s9 }
   0x3   :  { %14 = vsyncpa [#allocation5], 0 }
   0x4   :  { %16 = vsyncpa [#allocation5 + $0x1], 0  ;;  %s1534_s30 = smov 0   ;;  %s1536_s10 = smov 0  }
   0x5   :  { %s1538_s11 = smov 0   ;;  %s1540_s12 = smov 0  }
   0x6   :  { %s1542_s13 = smov 0   ;;  %s1544_s14 = smov 0  }
   0x7   :  { %s1546_s15 = smov 0   ;;  %s1548_s16 = smov 0  }
   0x8   :  { %s1550_s17 = smov 0   ;;  %s1552_s18 = smov 0  }
   0x9 LB: > { %1818 = sst [smem:[#allocation7_spill]] %s1445_s30  ;;  %s1099_s19 = sadd.s32 4294967295, %s1481_s18   ;;  %s1481_s18 = sphi %s1552_s18, %s22_s18   ;;  %s1477_s17 = sphi %s1550_s17, %s1842_s17   ;;  %s1473_s16 = sphi %s1548_s16, %s1841_s16   ;;  %s1469_s15 = sphi %s1546_s15, %s1840_s15   ;;  %s1465_s14 = sphi %s1544_s14, %s1839_s14   ;;  %s1461_s13 = sphi %s1542_s13, %s1847_s13   ;;  %s1457_s12 = sphi %s1540_s12, %s1846_s12   ;;  %s1453_s11 = sphi %s1538_s11, %s1845_s11   ;;  %s1449_s10 = sphi %s1536_s10, %s1844_s10   ;;  %s1445_s30 = sphi %s1534_s30, %s1843_s30  }
   0xa   : > { %1819 = sst [smem:[#allocation8_spill]] %s1473_s16  ;;  %s1100_s20 = sadd.s32 4294967294, %s1481_s18  }
   0xb   : > { %1820 = sst [smem:[#allocation9_spill]] %s1477_s17  ;;  %s31_s21 = sadd.s32 1, %s1473_s16 }
   0xc   : > { %s34_s22 = sadd.s32 1, %s1477_s17  ;;  %p32_p0 = scmp.ge.s32.totalorder %s31_s21, 4 }
   0xd   : > { %s43_s23 = sadd.s32 1, %s1461_s13  ;;  %p50_p1 = scmp.ne.s32.totalorder %s1461_s13, %s1457_s12 }
   0xe   : > { %p51_p2 = scmp.eq.s32.totalorder %s1481_s18, 0  ;;  %s1849_s21 = smov (%p32_p0, %s31_s21), 0 }
   0xf   : > { %1821 = sst [smem:[#allocation10_spill]] %s1849_s21  ;;  %s1851_s22 = smov (!%p32_p0, %s34_s22), %s1477_s17 }
  0x10   : > { %s38_s24 = ssub.s32 %s1473_s16, %s1849_s21  ;;  %p1597_p3 = por %p51_p2, %p50_p1 }
  0x11   : > { %p36_p4 = scmp.ge.s32.totalorder %s1851_s22, 2  ;;  %s262_s26 = sadd.s32 1, %s1453_s11 }
  0x12   : > { %p272_p5 = scmp.ne.s32.totalorder %s1453_s11, %s1449_s10  ;;  %p273_p6 = scmp.eq.s32.totalorder %s1099_s19, 7 }
  0x13   : > { %s1853_s22 = smov (%p36_p4, %s1851_s22), 0  ;;  %p278_p8 = scmp.ne.s32.totalorder %s1449_s10, %s1445_s30 }
  0x14   : > { %1823 = sst [smem:[#allocation11_spill]] %s1853_s22  ;;  %p1606_p7 = por %p273_p6, %p272_p5 }
  0x15   : > { %s39_s28 = ssub.s32 %s1477_s17, %s1853_s22  ;;  %p279_p9 = scmp.eq.s32.totalorder %s1100_s20, 7 }
  0x16   : > { %s40_s29 = sor.u32 %s39_s28, %s38_s24  ;;  %p260_p10 = scmp.eq.s32.totalorder %s39_s28, 0 }
  0x17   : > { %p41_p11 = scmp.eq.s32.totalorder %s40_s29, 0  ;;  %p1614_p12 = por %p279_p9, %p278_p8 }
  0x18   : > { %s1619_s9 = scalar_select %p260_p10, %s1453_s11, %s262_s26  }
  0x19   : > { %s1825_s21 = scalar_select %p1614_p12, 1, 0 }
  0x1a   : > { %s1622_s19 = scalar_select %p41_p11, %s1461_s13, %s43_s23  }
  0x1b   : > { %1826 = sst [smem:[#allocation12_spill]] %s1825_s21  ;;  %p1102_p13 = scmp.ge.s32.totalorder %s1481_s18, 8 }
  0x1d   : > { %304 = sbr.rel (%p1102_p13) target bundleno = 46 (0x2e), region = 28 }
  0x22   : > { %307 = sbr.rel (!%p1597_p3) target bundleno = 46 (0x2e), region = 32  ;;  %s309_s20 = sand.u32 (%p1597_p3), 1, %s1461_s13  }
  0x23   : > { %s1104_s24 = sshll.u32 (%p1597_p3), %s1473_s16, 2  ;;  %s1103_s28 = sshll.u32 (%p1597_p3), %s309_s20, 3 }
  0x24   : > { %s313_s29 = sadd.s32 (%p1597_p3), %s1477_s17, %s1104_s24  ;;  %s1827_s0 = sld [smem:[#allocation13_spill]] (%p1597_p3) }
  0x25   : > { %s1105_s22 = sshll.u32 (%p1597_p3), %s313_s29, 2  ;;  %s311_s23 = scalar_lea.vmem (%p1597_p3), [#allocation3], %s1103_s28 }
  0x2a   : > { %s315_s26 = scalar_lea.vmem %s1827_s0, %s1105_s22 }
  0x2b   : > { %v332_v0 = vld [vmem:[%s315_s26] sm:$0xf]  ;;  %v334_v1 = vld [vmem:[%s315_s26 + $0x8] sm:$0xf] }
  0x2c   : > { %333 = vst [vmem:[%s311_s23] sm:$0xf] %v332_v0 }
  0x2d   : > { %335 = vst [vmem:[%s311_s23 + $0x4] sm:$0xf] %v334_v1 }
  0x2e PF: > { %p1106_p0 = scmp.ge.s32.totalorder %s1481_s18, 1  ;;  %p398_p1 = scmp.lt.s32.totalorder %s1481_s18, 9 }
  0x30   : > { %p399_p2 = pnand %p1106_p0, %p398_p1 }
  0x31   : > { %s458_s30 = sand.u32 (!%p399_p2), 1, %s1449_s10   ;;  %p461_p3 = scmp.lt.s32.totalorder (!%p399_p2), %s1465_s14, 3 }
  0x32   : > { %402 = sbr.rel (%p399_p2) target bundleno = 705 (0x2c1), region = 93  ;;  %s1639_s21 = sshll.u32 (!%p399_p2), %s458_s30, 1 }
  0x33   : > { %s405_s25 = sand.u32 (!%p399_p2), 1, %s1457_s12   ;;  %p1219_p4 = scmp.ne.s32.totalorder (!%p399_p2), %s1465_s14, 0 }
  0x34   : > { %s1107_s16 = sshll.u32 (!%p399_p2), %s405_s25, 3 }
  0x35   : > { %s407_s12 = scalar_lea.vmem (!%p399_p2), [#allocation3], %s1107_s16 }
  0x37   : > { %s1642_s22 = scalar_select %p461_p3, %s1465_s14, 3  ;;  %v1252_v8 = vld [vmem:[%s407_s12] sm:$0xff]  ;;  %vm538_vm0 = vcmask 261120   ;;  %v483_v21 = vlaneseq  ;;  %vm685_vm7 = vcmask 523264  }
  0x39   : > { %s1277_s20 = smul.u32 48, %s1642_s22  ;;  %s1251_s24 = sshll.u32 %s1642_s22, 4  ;;  %v484_v23 = vshrl.u32 %v483_v21, 7 }
  0x3a   : > { %s1650_s26 = scalar_lea.vmem %s1804_s5, %s1251_s24  ;;  %s1278_s24 = smul.u32 96, %s1642_s22 }
  0x3b   : > { %s465_s17 = scalar_lea.vmem %s1800_s1, %s1277_s20  ;;  %s468_s20 = scalar_lea.vmem %s1801_s2, %s1642_s22  ;;  %v485_v24 = vadd.s32 8, %v484_v23  ;;  %v490_v27 = vand.u32 7, %v484_v23  ;;  %vm620_vm1 = vcmp.lt.s32.totalorder %v484_v23, 1  ;;  %vm631_vm4 = vcmp.lt.s32.totalorder %v484_v23, 7 }
  0x3c   : > { %v1254_v2 = vld [vmem:[%s465_s17 + $0x8] sm:$0xff]  ;;  %v1256_v3 = vld [vmem:[%s465_s17 + $0x18] sm:$0xff]  ;;  %v1253_v5 = vld [vmem:[%s465_s17] sm:$0xff]  ;;  %s473_s16 = scalar_lea.vmem %s1802_s3, %s1278_s24  ;;  %s476_s25 = scalar_lea.vmem %s1803_s4, %s1642_s22 }
  0x3d   : > { %v1258_v4 = vld [vmem:[%s465_s17 + $0x28] sm:$0xff]  ;;  %548 = vmatpush.bf16.msra.mxu0 %v1254_v2  ;;  %579 = vmatpush.bf16.msra.mxu1 %v1256_v3  ;;  %v1255_v6 = vld [vmem:[%s465_s17 + $0x10] sm:$0xff]  ;;  %v1257_v7 = vld [vmem:[%s465_s17 + $0x20] sm:$0xff]  ;;  %v497_v29 = vand.u32 7, %v485_v24  ;;  %vm1666_vm2 = vcmp.eq.s32.totalorder %v490_v27, 0  ;;  %vm1680_vm5 = vcmp.eq.s32.totalorder %v490_v27, 7 }
  0x3e   : > { %610 = vmatpush.bf16.msra.mxu2 %v1258_v4  ;;  %v1262_v9 = vld [vmem:[%s473_s16 + $0x18] sm:$0xff]  ;;  %v1261_v12 = vld [vmem:[%s473_s16 + $0x10] sm:$0xff]  ;;  %v1260_v15 = vld [vmem:[%s473_s16 + $0x8] sm:$0xff]  ;;  %s460_s22 = scalar_lea.vmem [#allocation4], %s1639_s21 }
  0x3f   : > { %v1266_v10 = vld [vmem:[%s473_s16 + $0x38] sm:$0xff]  ;;  %693 = vmatpush.bf16.msra.mxu3 %v1262_v9  ;;  %v1265_v13 = vld [vmem:[%s473_s16 + $0x30] sm:$0xff]  ;;  %v1264_v16 = vld [vmem:[%s473_s16 + $0x28] sm:$0xff]  ;;  %vm1671_vm3 = vcmp.eq.s32.totalorder %v497_v29, 0  ;;  %vm1684_vm6 = vcmp.eq.s32.totalorder %v497_v29, 7 }
  0x40   : > { %v1270_v11 = vld [vmem:[%s473_s16 + $0x58] sm:$0xff]  ;;  %v1269_v14 = vld [vmem:[%s473_s16 + $0x50] sm:$0xff]  ;;  %v1268_v17 = vld [vmem:[%s473_s16 + $0x48] sm:$0xff] }
  0x41   : > { %549 = vmatpush.bf16.msra.mxu0 %v1253_v5  ;;  %580 = vmatpush.bf16.msra.mxu1 %v1255_v6  ;;  %v1259_v18 = vld [vmem:[%s473_s16] sm:$0xff] }
  0x42   : > { %611 = vmatpush.bf16.msra.mxu2 %v1257_v7  ;;  %v1263_v19 = vld [vmem:[%s473_s16 + $0x20] sm:$0xff] }
  0x43   : > { %694 = vmatpush.bf16.msra.mxu3 %v1261_v12  ;;  %v1267_v20 = vld [vmem:[%s473_s16 + $0x40] sm:$0xff] }
  0x44   : > { %1125 = vmatmul.msk.bf16.vlgmr.msra.gmra.mxu0 %vm538_vm0, %v1252_v8  ;;  %1138 = vmatmul.msk.bf16.vlgmr.msra.gmra.mxu1 %vm538_vm0, %v1252_v8  ;;  %v1367_v48 = vld [vmem:[%s468_s20] ss:$0 sm:$0xff] }
  0x45   : > { %1151 = vmatmul.msk.bf16.vlgmr.msra.gmra.mxu2 %vm538_vm0, %v1252_v8  ;;  %740 = vmatpush.bf16.msrb.mxu0 %v1266_v10  ;;  %v1368_v12 = vld [vmem:[%s476_s25] ss:$0 sm:$0xff] }
  0x46   : > { %787 = vmatpush.bf16.msrb.mxu1 %v1270_v11 }
  0x47   : > { %695 = vmatpush.bf16.msra.mxu3 %v1260_v15 }
  0x49   : > { %741 = vmatpush.bf16.msrb.mxu0 %v1265_v13 }
  0x4a   : > { %788 = vmatpush.bf16.msrb.mxu1 %v1269_v14 }
  0x4b   : > { %696 = vmatpush.bf16.msra.mxu3 %v1259_v18 }
  0x4d   : > { %742 = vmatpush.bf16.msrb.mxu0 %v1264_v16 }
  0x4e   : > { %789 = vmatpush.bf16.msrb.mxu1 %v1268_v17 }
  0x51   : > { %743 = vmatpush.bf16.msrb.mxu0 %v1263_v19 }
  0x52   : > { %790 = vmatpush.bf16.msrb.mxu1 %v1267_v20 }
  0xc1   : > { %v551_v22 = vpop.f32.mrf.mxu0  ;;  %v582_v25 = vpop.f32.mrf.mxu1 }
  0xc2   : > { %v618_v31 = vrot.slane %v551_v22, 7 }
  0xc8   : > { %v613_v26 = vpop.f32.mrf.mxu2 }
  0xc9   : > { %v553_v28 = vpop.f32.mrf.mxu0  ;;  %v629_v39 = vrot.slane %v613_v26, 1  ;;  %v584_v43 = vpop.f32.mrf.mxu1 }
  0xca   : > { %v619_v30 = vrot.slane %v553_v28, 7 }
  0xcc   : > { %v622_v33 = vsel %vm620_vm1, %v619_v30, %v618_v31  ;;  %v621_v35 = vsel %vm620_vm1, %v618_v31, %v619_v30 }
  0xcd   : > { %v627_v36 = vsel %vm1666_vm2, 0.0, %v622_v33  ;;  %v628_v37 = vsel %vm1671_vm3, 0.0, %v621_v35 }
  0xce   : > { %v640_v44 = vadd.f32 %v627_v36, %v582_v25  ;;  %v641_v45 = vadd.f32 %v628_v37, %v584_v43 }
  0xd0   : > { %v615_v38 = vpop.f32.mrf.mxu2 }
  0xd1   : > { %v630_v42 = vrot.slane %v615_v38, 1 }
  0xd3   : > { %v632_v46 = vsel %vm631_vm4, %v629_v39, %v630_v42  ;;  %v633_v47 = vsel %vm631_vm4, %v630_v42, %v629_v39 }
  0xd4   : > { %v638_v49 = vsel %vm1680_vm5, 0.0, %v632_v46  ;;  %v639_v50 = vsel %vm1684_vm6, 0.0, %v633_v47 }
  0xd5   : > { %v642_v51 = vadd.f32 %v640_v44, %v638_v49  ;;  %v643_v52 = vadd.f32 %v641_v45, %v639_v50 }
  0xd7   : > { %v647_v53 = vadd.f32 %v1367_v48, %v642_v51  ;;  %v648_v54 = vadd.f32 %v1367_v48, %v643_v52 }
  0xd9   : > { %v649_v55 = vmax.f32 %v647_v53, 0.0  ;;  %v650_v56 = vmax.f32 %v648_v54, 0.0 }
  0xdb   : > { %v651_v57 = vpack.c.bf16 %v650_v56, %v649_v55 }
  0xdd   : > { %1168 = vmatmul.msk.bf16.vlgmr.msra.gmra.mxu3 %vm685_vm7, %v651_v57  ;;  %1193 = vmatmul.msk.bf16.vlgmr.msrb.gmra.mxu0 %vm685_vm7, %v651_v57 }
  0xde   : > { %1218 = vmatmul.msk.bf16.vlgmr.msrb.gmra.mxu1 %vm685_vm7, %v651_v57 }
 0x15a   : > { %v745_v60 = vpop.f32.mrf.mxu0 }
 0x15b   : > { %v792_v58 = vpop.f32.mrf.mxu1 }
 0x15c   : > { %v803_v0 = vrot.slane %v792_v58, 1 }
 0x160   : > { %v698_v59 = vpop.f32.mrf.mxu3 }
 0x161   : > { %v797_v1 = vrot.slane %v698_v59, 7 }
 0x162   : > { %v747_v7 = vpop.f32.mrf.mxu0 }
 0x163   : > { %v794_v61 = vpop.f32.mrf.mxu1 }
 0x164   : > { %v804_v62 = vrot.slane %v794_v61, 1 }
 0x166   : > { %v805_v3 = vsel %vm631_vm4, %v803_v0, %v804_v62  ;;  %v806_v4 = vsel %vm631_vm4, %v804_v62, %v803_v0 }
 0x167   : > { %v807_v13 = vsel %vm1680_vm5, 0.0, %v805_v3  ;;  %v808_v14 = vsel %vm1684_vm6, 0.0, %v806_v4 }
 0x168   : > { %v700_v63 = vpop.f32.mrf.mxu3 }
 0x169   : > { %v798_v2 = vrot.slane %v700_v63, 7 }
 0x16b   : > { %v799_v5 = vsel %vm620_vm1, %v797_v1, %v798_v2  ;;  %v800_v6 = vsel %vm620_vm1, %v798_v2, %v797_v1 }
 0x16c   : > { %v801_v8 = vsel %vm1666_vm2, 0.0, %v800_v6  ;;  %v802_v9 = vsel %vm1671_vm3, 0.0, %v799_v5 }
 0x16d   : > { %v809_v10 = vadd.f32 %v801_v8, %v745_v60  ;;  %v810_v11 = vadd.f32 %v802_v9, %v747_v7 }
 0x16f   : > { %v811_v15 = vadd.f32 %v809_v10, %v807_v13  ;;  %v812_v16 = vadd.f32 %v810_v11, %v808_v14 }
 0x171   : > { %v816_v17 = vadd.f32 %v1368_v12, %v811_v15  ;;  %v817_v18 = vadd.f32 %v1368_v12, %v812_v16 }
 0x173   : > { %v818_v19 = vmax.f32 %v816_v17, 0.0  ;;  %v819_v20 = vmax.f32 %v817_v18, 0.0 }
 0x175   : > { %v820_v21 = vsel %vm538_vm0, %v818_v19, 0.0  ;;  %v827_v22 = vsel %vm538_vm0, %v819_v20, 0.0 }
 0x176   : > { %v821_v23 = vrot.slane %v820_v21, 4  ;;  %v828_v24 = vrot.slane %v827_v22, 4 }
 0x178   : > { %v822_v25 = vadd.f32 %v821_v23, %v820_v21  ;;  %v829_v26 = vadd.f32 %v828_v24, %v827_v22 }
 0x17a   : > { %v823_v27 = vrot.slane %v822_v25, 2  ;;  %v830_v28 = vrot.slane %v829_v26, 2 }
 0x17c   : > { %v824_v29 = vadd.f32 %v823_v27, %v822_v25  ;;  %v831_v30 = vadd.f32 %v830_v28, %v829_v26  ;;  %837 = sbr.rel (%p1219_p4) target bundleno = 387 (0x183), region = 101 }
 0x17e   : > { %v825_v31 = vrot.slane %v824_v29, 1  ;;  %v832_v32 = vrot.slane %v831_v30, 1 }
 0x180   : > { %v826_v33 = vadd.f32 %v825_v31, %v824_v29  ;;  %v833_v34 = vadd.f32 %v832_v32, %v831_v30 }
 0x181   : > { %vm838_vm8 = vcmask 517120   ;;  %v1483_v35 = vmov 0.0  }
 0x182   : > { %839 = vst.msk [vmem:[#allocation2] sm:$0x3] %vm838_vm8, %v1483_v35 }
 0x183 PF: > { %v1272_v36 = vld [vmem:[%s1650_s26 + $0x8] sm:$0xff]  ;;  %v841_v37 = vpack.c.bf16 %v826_v33, %v826_v33  ;;  %v842_v38 = vpack.c.bf16 %v833_v34, %v833_v34  ;;  %vm851_vm9 = vcmask 1041409   ;;  %v1271_v39 = vld [vmem:[%s1650_s26] sm:$0xff]  ;;  %vm883_vm10 = vcmask 517120   ;;  %p1229_p5 = scmp.ne.s32.totalorder %s1465_s14, 3 }
 0x184   : > { %875 = vmatpush.bf16.msrb.mxu2 %v1272_v36 }
 0x185   : > { %v849_v40 = vunpack.c.l.b16 %v841_v37  ;;  %v850_v41 = vunpack.c.l.b16 %v842_v38 }
 0x187   : > { %v852_v42 = vsel %vm851_vm9, %v850_v41, %v849_v40 }
 0x188   : > { %v853_v43 = vpack.c.b16 %v852_v42, %v852_v42  ;;  %876 = vmatpush.bf16.msrb.mxu2 %v1271_v39 }
 0x189   : > { %v840_v44 = vld [vmem:[#allocation2] sm:$0x3] }
 0x18b   : > { %1228 = vmatmul.msk.bf16.vlgmr.msrb.gmra.mxu2 %vm538_vm0, %v853_v43 }
 0x20e   : > { %v878_v45 = vpop.f32.mrf.mxu2 }
 0x20f   : > { %v882_v46 = vadd.f32 %v878_v45, %v840_v44 }
 0x211   : > { %884 = vst.msk [vmem:[#allocation2] sm:$0x3] %vm883_vm10, %v882_v46 }
 0x212   : > { %888 = sbr.rel (%p1229_p5) target bundleno = 685 (0x2ad), region = 105 }
 0x216   : > { %v880_v47 = vpop.f32.mrf.mxu2 }
 0x217   : > { %v1276_v48 = vld [vmem:[%s1806_s7 + $0x18] sm:$0xff]  ;;  %v1275_v49 = vld [vmem:[%s1806_s7 + $0x10] sm:$0xff]  ;;  %v1369_v51 = vld [vmem:[%s1805_s6] ss:$0 sm:$0xff]  ;;  %vm949_vm11 = vcmask 123904  }
 0x218   : > { %940 = vmatpush.bf16.msra.mxu0 %v1276_v48  ;;  %v889_v50 = vld [vmem:[#allocation2] sm:$0x3]  ;;  %v1274_v53 = vld [vmem:[%s1806_s7 + $0x8] sm:$0xff] }
 0x219   : > { %v894_v52 = vadd.f32 %v1369_v51, %v889_v50  ;;  %v1273_v55 = vld [vmem:[%s1806_s7] sm:$0xff] }
 0x21a   : > { %v1370_v57 = vld [vmem:[%s1807_s8] ss:$0 sm:$0xff] }
 0x21b   : > { %v895_v54 = vmax.f32 %v894_v52, 0.0 }
 0x21c   : > { %941 = vmatpush.bf16.msra.mxu0 %v1275_v49 }
 0x21d   : > { %v896_v56 = vpack.c.bf16 %v895_v54, %v895_v54 }
 0x220   : > { %942 = vmatpush.bf16.msra.mxu0 %v1274_v53 }
 0x224   : > { %943 = vmatpush.bf16.msra.mxu0 %v1273_v55 }
 0x227   : > { %1246 = vmatmul.msk.bf16.vlgmr.msra.gmra.mxu0 %vm685_vm7, %v896_v56 }
 0x2a4   : > { %v945_v58 = vpop.f32.mrf.mxu0 }
 0x2a5   : > { %v946_v59 = vadd.f32 %v1370_v57, %v945_v58 }
 0x2a7   : > { %950 = vst.msk [vmem:[%s460_s22] sm:$0x3] %vm949_vm11, %v946_v59 }
 0x2ac   : > { %v947_v60 = vpop.f32.mrf.mxu0 }
 0x2ad PF: > { %s1248_s20 = sshll.u32 %s1469_s15, 1  ;;  %s1836_s28 = sld [smem:[#allocation14_spill]] }
 0x2ae   : > { %s964_s16 = sshll.u32 %s460_s22, 4  ;;  %s952_s14 = scalar_lea.sflag [#allocation5], %s458_s30  ;;  %s965_s16 = int_to_ptr.vmem [resolvable:$true] %s964_s16 }
 0x2b3   : > { %s962_s29 = scalar_lea.hbm %s1836_s28, %s1248_s20  ;;  %s1391_s25 = scalar_lea.hbm %s1836_s28, 4 }
 0x2b4   : > { %s966_s17 = sshll.u32 %s962_s29, 4  ;;  %s967_s17 = int_to_ptr.hbm [resolvable:$true] %s966_s17 }
 0x2b5   : > { %s1385_s23 = sshra.s32 %s967_s17, 4  ;;  %s1386_s23 = int_to_ptr.hbm [resolvable:$true] %s1385_s23 }
 0x2b6   : > { %s1387_s12 = scalar_lea.hbm %s1386_s23, 2  ;;  %p1392_p10 = scmp.lt.s32.totalorder %s1386_s23, %s1836_s28 }
 0x2b7   : > { %p1388_p6 = scmp.ne.s32.totalorder %s1386_s23, %s1387_s12  ;;  %p1393_p11 = scmp.lt.s32.totalorder %s1391_s25, %s1387_s12 }
 0x2b9   : > { %p1389_p8 = pnand %p1388_p6, %p1606_p7  ;;  %p1394_p13 = por %p1393_p11, %p1392_p10 }
 0x2bb   : > { %p1390_p9 = pneg %p1389_p8 }
 0x2bd   : > { %p1395_p0 = pnand %p1394_p13, %p1390_p9 }
 0x2bf   : > { %1398 = shalt.err (!%p1395_p0)
}
 0x2c0   : > { %1279 = dma.vmem_to_hbm [thread:$0]  (%p1606_p7), %s965_s16, 32, %s967_s17, %s952_s14  }
 0x2c1 PF: > { %s1837_s30 = sld [smem:[#allocation7_spill]]  ;;  %p1285_p1 = scmp.ge.s32.totalorder %s1481_s18, 2 }
 0x2c3   : > { %p1282_p2 = pnand %p1285_p1, %p1614_p12 }
 0x2c5   : > { %p1283_p3 = pneg %p1282_p2 }
 0x2c7   : > { %s978_s22 = sand.u32 1, %s1837_s30  }
 0x2c8   : > { %s979_s26 = scalar_lea.sflag [#allocation5], %s978_s22 }
 0x2c9   : > { %1440 = dma.done.wait (%p1283_p3), %s979_s26, 32  }
 0x2ca   : > { %1442 = vsyncadd (%p1283_p3), %s979_s26, 4294967264  ;;  %s22_s18 = sadd.s32 1, %s1481_s18   ;;  %s1839_s14 = sld [smem:[#allocation8_spill]] }
 0x2cb   : > { %p19_p4 = scmp.ge.s32.totalorder %s22_s18, 10   ;;  %s1840_s15 = sld [smem:[#allocation9_spill]] }
 0x2cc   : > { %s1841_s16 = sld [smem:[#allocation10_spill]]  ;;  %s1843_s30 = smov %s1449_s10 }
 0x2cd   : > { %s1842_s17 = sld [smem:[#allocation11_spill]]  ;;  %s1844_s10 = smov %s1453_s11 }
 0x2ce   : > { %s1845_s11 = smov %s1619_s9  ;;  %s1846_s12 = smov %s1461_s13 }
 0x2cf   : > { %s1847_s13 = smov %s1622_s19  ;;  %21 = sbr.rel (!%p19_p4) target bundleno = 9 (0x9), region = 164 }
 0x2d4   :  { %985 = vsyncpa [#allocation5], 1 }
 0x2d5   :  { %987 = vsyncpa [#allocation5 + $0x1], 1 }

</bundles_post_ra>
